<compile_context>
chip_gen: v6e
topology: v6e:2x2x1
jax: 0.10.0
libtpu: 0.0.40
codegen_flags: <defaults>
</compile_context>

<pallas_src>
import functools

import jax
import jax.numpy as jnp
from jax.experimental import pallas as pl
from jax.experimental.pallas import tpu as pltpu


# ------------------------------------------------------------- small helpers

def _round_up(v, m):
    return ((v + m - 1) // m) * m


def _pick_tile(dim, pref):
    """Largest power-of-two tile <= pref that divides dim (dim is a mult of 128)."""
    t = pref
    while dim % t:
        t //= 2
    return t


_VMEM_SPEC = pl.BlockSpec(memory_space=pltpu.MemorySpace.VMEM)


# ------------------------------------------------------------------- kernels

def _xw_kernel(x_ref, w_ref, xw_ref):
    """Row tile of XW = x @ W_enc (W stays resident)."""
    xw_ref[...] = jnp.dot(
        x_ref[...], w_ref[...], preferred_element_type=jnp.float32
    ).astype(xw_ref.dtype)


def _gcn_spmm_kernel(a_ref, rhs_ref, dcol_ref, out_ref, acc_ref, *, tk):
    """out_tile = d_row * relu( sum_k A[i,k] @ rhs[k] ), f32 accumulation."""
    k = pl.program_id(1)

    @pl.when(k == 0)
    def _():
        acc_ref[...] = jnp.zeros_like(acc_ref)

    start = pl.multiple_of(k * tk, tk)
    acc_ref[...] += jnp.dot(
        a_ref[...],                      # (TM, TK) bf16
        rhs_ref[pl.ds(start, tk), :],    # (TK, Wp) bf16, resident in VMEM
        preferred_element_type=jnp.float32,
    )

    @pl.when(k == pl.num_programs(1) - 1)
    def _():
        out_ref[...] = (
            jnp.maximum(acc_ref[...], 0.0) * dcol_ref[...]
        ).astype(out_ref.dtype)


def _project_kernel(z_ref, wpt_ref, bp_ref, g_ref):
    """g = sigmoid(mean(z, axis=0, keepdims=True)) @ W_proj.T + b (W pre-transposed)."""
    m = jnp.mean(z_ref[...], axis=0, keepdims=True)        # (1, H)
    s = jax.nn.sigmoid(m)
    g = jnp.dot(s, wpt_ref[...], preferred_element_type=jnp.float32)
    g_ref[...] = (g + bp_ref[...]).astype(g_ref.dtype)


# ----------------------------------------------------------- kernel wrappers

def xw_matmul(x_pad, w_enc, tm):
    np_, f = x_pad.shape
    h = w_enc.shape[1]
    return pl.pallas_call(
        _xw_kernel,
        out_shape=jax.ShapeDtypeStruct((np_, h), jnp.float32),
        grid_spec=pltpu.PrefetchScalarGridSpec(
            num_scalar_prefetch=0,
            grid=(np_ // tm,),
            in_specs=[
                pl.BlockSpec((tm, f), lambda i: (i, 0)),
                pl.BlockSpec((f, h), lambda i: (0, 0)),
            ],
            out_specs=pl.BlockSpec((tm, h), lambda i: (i, 0)),
        ),
        compiler_params=pltpu.CompilerParams(
            dimension_semantics=("parallel",)),
    )(x_pad, w_enc)


def gcn_spmm(a_bf16, rhs_bf16, d_col, tm, tk):
    np_, wp_ = rhs_bf16.shape
    kernel = functools.partial(_gcn_spmm_kernel, tk=tk)
    return pl.pallas_call(
        kernel,
        out_shape=jax.ShapeDtypeStruct((np_, wp_), jnp.float32),
        grid_spec=pltpu.PrefetchScalarGridSpec(
            num_scalar_prefetch=0,
            grid=(np_ // tm, np_ // tk),
            in_specs=[
                # A streamed in (TM, TK) bf16 blocks.
                pl.BlockSpec((tm, tk), lambda i, k: (i, k)),
                # rhs = [D^-1/2 XW | D^-1/2 XW[perm]] stays resident (block idx const).
                pl.BlockSpec((np_, wp_), lambda i, k: (0, 0)),
                # per-row D^-1/2 scale for the output tile.
                pl.BlockSpec((tm, 1), lambda i, k: (i, 0)),
            ],
            out_specs=pl.BlockSpec((tm, wp_), lambda i, k: (i, 0)),
            scratch_shapes=[pltpu.VMEM((tm, wp_), jnp.float32)],
        ),
        compiler_params=pltpu.CompilerParams(
            dimension_semantics=("parallel", "arbitrary")),
    )(a_bf16, rhs_bf16, d_col)


def project_summary(z, w_proj_t, b_proj):
    h = w_proj_t.shape[1]
    return pl.pallas_call(
        _project_kernel,
        out_shape=jax.ShapeDtypeStruct((1, h), jnp.float32),
        in_specs=[_VMEM_SPEC, _VMEM_SPEC, _VMEM_SPEC],
        out_specs=_VMEM_SPEC,
    )(z, w_proj_t, b_proj)


# --------------------------------------------------------------- glue / model

def build_adjacency(edge_index, num_nodes):
    """Dense symmetric adjacency with self loops + D^-1/2 vector.

    Normalization (and A_hat itself) is NOT materialized here; the kernel
    applies D^-1/2 on the fly, so only this single 0/1-valued matrix is read.
    """
    # TODO(synk): scatter-based dense adjacency build has no clean Pallas
    # equivalent; for a static graph hoist this out of the per-step jit.
    src, dst = edge_index[0], edge_index[1]
    a = jnp.zeros((num_nodes, num_nodes), jnp.float32)
    a = a.at[src, dst].set(1.0)
    a = jnp.maximum(a, a.T)                                       # symmetrize
    a = jnp.maximum(a, jnp.eye(num_nodes, dtype=jnp.float32))     # self loops (dedup'd)
    deg = jnp.sum(a, axis=1)
    d_inv_sqrt = jnp.where(deg > 0, jax.lax.rsqrt(deg), 0.0)
    return a, d_inv_sqrt


@functools.partial(jax.jit, static_argnames=("num_nodes",))
def encoder_forward(params, x, edge_index, perm, num_nodes):
    n = num_nodes
    f = x.shape[1]
    h = params["w_enc"].shape[1]

    a, d_inv_sqrt = build_adjacency(edge_index, n)

    # ---- tiling / padding (lane-dense output slab of width Wp) --------------
    np_ = _round_up(n, 128)
    tm = _pick_tile(np_, 256)
    tk = _pick_tile(np_, 512)
    wp_ = _round_up(2 * h, 128)

    a_pad = jnp.zeros((np_, np_), jnp.bfloat16).at[:n, :n].set(
        a.astype(jnp.bfloat16))
    x_pad = jnp.zeros((np_, f), x.dtype).at[:n].set(x)
    d_pad = jnp.zeros((np_,), jnp.float32).at[:n].set(d_inv_sqrt)

    # ---- XW computed once; z and zn share it via (x[perm])@W == (x@W)[perm] --
    xw = xw_matmul(x_pad, params["w_enc"], tm)          # [np_, h] f32
    xw_n = xw[:n]
    rhs = jnp.zeros((np_, wp_), jnp.float32)
    rhs = rhs.at[:n, :h].set(xw_n)
    rhs = rhs.at[:n, h:2 * h].set(xw_n[perm])
    rhs = (rhs * d_pad[:, None]).astype(jnp.bfloat16)   # fold right D^-1/2

    # ---- one tiled pass over A produces both z and zn ------------------------
    out = gcn_spmm(a_pad, rhs, d_pad.reshape(np_, 1), tm, tk)   # [np_, wp_] f32
    z = out[:n, :h]
    zn = out[:n, h:2 * h]

    # ---- summary projection (W pre-transposed: no in-kernel XLU transpose) ---
    g = project_summary(z, params["w_proj"].T, params["b_proj"])
    return z, g, zn


def init_params(key, in_dim, hidden_dim):
    k1, k2, k3 = jax.random.split(key, 3)
    lim_enc = (6.0 / (in_dim + hidden_dim)) ** 0.5
    w_enc = jax.random.uniform(k1, (in_dim, hidden_dim), jnp.float32,
                               -lim_enc, lim_enc)
    bound = 1.0 / (hidden_dim ** 0.5)
    w_proj = jax.random.uniform(k2, (hidden_dim, hidden_dim), jnp.float32,
                                -bound, bound)
    b_proj = jax.random.uniform(k3, (1, hidden_dim), jnp.float32,
                                -bound, bound)
    return {"w_enc": w_enc, "w_proj": w_proj, "b_proj": b_proj}


if __name__ == "__main__":
    N, F, H, E = 8, 16, 32, 16     # nodes, in-features, hidden, edges

    key = jax.random.PRNGKey(0)
    kx, ke, kp, kperm = jax.random.split(key, 4)

    x = jax.random.normal(kx, (N, F), jnp.float32)
    edge_index = jax.random.randint(ke, (2, E), 0, N, jnp.int32)
    params = init_params(kp, F, H)
    # TODO(synk): torch.randperm uses torch's global RNG; fixed jax permutation here.
    perm = jax.random.permutation(kperm, N)

    z, g, zn = encoder_forward(params, x, edge_index, perm, num_nodes=N)
    jax.block_until_ready((z, g, zn))

    assert z.shape == (N, H) and g.shape == (1, H) and zn.shape == (N, H)
    print("KERNEL_OK")
</pallas_src>

<mosaic_0001>
module attributes {stable_mosaic.version = 11 : i64} {
  func.func @_xw_kernel(%arg0: i32, %arg1: memref<128x16xf32, #tpu.memory_space<vmem>>, %arg2: memref<16x32xf32, #tpu.memory_space<vmem>>, %arg3: memref<128x32xf32, #tpu.memory_space<vmem>>) attributes {dimension_semantics = [#tpu.dimension_semantics<parallel>], iteration_bounds = array<i64: 1>, scalar_prefetch = 0 : i64, scratch_operands = 0 : i64, tpu.core_type = #tpu.core_type<tc>, window_params = [{transform_indices = @transform_0, window_bounds = array<i64: 128, 16>}, {pipeline_mode = #tpu.pipeline_mode<synchronous>, transform_indices = @transform_1, window_bounds = array<i64: 16, 32>}, {transform_indices = @transform_2, window_bounds = array<i64: 128, 32>}]} {
    %c0 = arith.constant 0 : index
    %c0_0 = arith.constant 0 : index
    %0 = vector.load %arg1[%c0, %c0_0] : memref<128x16xf32, #tpu.memory_space<vmem>>, vector<128x16xf32>
    %c0_1 = arith.constant 0 : index
    %c0_2 = arith.constant 0 : index
    %1 = vector.load %arg2[%c0_1, %c0_2] : memref<16x32xf32, #tpu.memory_space<vmem>>, vector<16x32xf32>
    %cst = arith.constant dense<0.000000e+00> : vector<128x32xf32>
    %2 = tpu.matmul %0, %1, %cst {dimension_numbers = #tpu.dot_dimension_numbers<[1], [0], [0], [1], [0, 0, 1, 1], [], []>} : vector<128x16xf32>, vector<16x32xf32>, vector<128x32xf32> -> vector<128x32xf32>
    %c0_3 = arith.constant 0 : index
    %c0_4 = arith.constant 0 : index
    %3 = vector.load %arg3[%c0_3, %c0_4] : memref<128x32xf32, #tpu.memory_space<vmem>>, vector<128x32xf32>
    tpu.vector_store %arg3[%c0_3, %c0_4], %2 {strides = array<i32>} : memref<128x32xf32, #tpu.memory_space<vmem>>, vector<128x32xf32>,
    return
  }
  func.func @transform_0(%arg0: i32) -> (i32, i32) {
    %c0_i32 = arith.constant 0 : i32
    %c0_i32_0 = arith.constant 0 : i32
    return %arg0, %c0_i32 : i32, i32
  }
  func.func @transform_1(%arg0: i32) -> (i32, i32) {
    %c0_i32 = arith.constant 0 : i32
    %c0_i32_0 = arith.constant 0 : i32
    %c0_i32_1 = arith.constant 0 : i32
    return %c0_i32, %c0_i32_0 : i32, i32
  }
  func.func @transform_2(%arg0: i32) -> (i32, i32) {
    %c0_i32 = arith.constant 0 : i32
    %c0_i32_0 = arith.constant 0 : i32
    return %arg0, %c0_i32 : i32, i32
  }
}

module attributes {stable_mosaic.version = 11 : i64} {
  func.func @_gcn_spmm_kernel(%arg0: i32, %arg1: i32, %arg2: memref<128x128xbf16, #tpu.memory_space<vmem>>, %arg3: memref<128x128xbf16, #tpu.memory_space<vmem>>, %arg4: memref<128x1xf32, #tpu.memory_space<vmem>>, %arg5: memref<128x128xf32, #tpu.memory_space<vmem>>, %arg6: memref<128x128xf32, #tpu.memory_space<vmem>>) attributes {dimension_semantics = [#tpu.dimension_semantics<parallel>, #tpu.dimension_semantics<arbitrary>], iteration_bounds = array<i64: 1, 1>, scalar_prefetch = 0 : i64, scratch_operands = 1 : i64, tpu.core_type = #tpu.core_type<tc>, window_params = [{transform_indices = @transform_0, window_bounds = array<i64: 128, 128>}, {pipeline_mode = #tpu.pipeline_mode<synchronous>, transform_indices = @transform_1, window_bounds = array<i64: 128, 128>}, {transform_indices = @transform_2, window_bounds = array<i64: 128, 1>}, {transform_indices = @transform_3, window_bounds = array<i64: 128, 128>}]} {
    %c0_i32 = arith.constant 0 : i32
    %0 = arith.cmpi eq, %arg1, %c0_i32 : i32
    %1 = arith.extui %0 : i1 to i32
    %c0_i32_0 = arith.constant 0 : i32
    %2 = arith.cmpi ne, %1, %c0_i32_0 : i32
    scf.if %2 {
      %cst_9 = arith.constant 0.000000e+00 : f32
      %15 = vector.broadcast %cst_9 : f32 to vector<128x128xf32>
      %c0_10 = arith.constant 0 : index
      %c0_11 = arith.constant 0 : index
      %16 = vector.load %arg6[%c0_10, %c0_11] : memref<128x128xf32, #tpu.memory_space<vmem>>, vector<128x128xf32>
      tpu.vector_store %arg6[%c0_10, %c0_11], %15 {strides = array<i32>} : memref<128x128xf32, #tpu.memory_space<vmem>>, vector<128x128xf32>,
    } else {
    }
    %c128_i32 = arith.constant 128 : i32
    %3 = arith.muli %arg1, %c128_i32 : i32
    %4 = tpu.assume_multiple %3, 128 : i32
    %c0 = arith.constant 0 : index
    %c0_1 = arith.constant 0 : index
    %5 = vector.load %arg6[%c0, %c0_1] : memref<128x128xf32, #tpu.memory_space<vmem>>, vector<128x128xf32>
    %c0_2 = arith.constant 0 : index
    %c0_3 = arith.constant 0 : index
    %6 = vector.load %arg2[%c0_2, %c0_3] : memref<128x128xbf16, #tpu.memory_space<vmem>>, vector<128x128xbf16>
    %7 = arith.index_cast %4 : i32 to index
    %c0_4 = arith.constant 0 : index
    %8 = vector.load %arg3[%7, %c0_4] : memref<128x128xbf16, #tpu.memory_space<vmem>>, vector<128x128xbf16>
    %cst = arith.constant dense<0.000000e+00> : vector<128x128xf32>
    %9 = tpu.matmul %6, %8, %cst {dimension_numbers = #tpu.dot_dimension_numbers<[1], [0], [0], [1], [0, 0, 1, 1], [], []>} : vector<128x128xbf16>, vector<128x128xbf16>, vector<128x128xf32> -> vector<128x128xf32>
    %10 = arith.addf %5, %9 : vector<128x128xf32>
    %c0_5 = arith.constant 0 : index
    %c0_6 = arith.constant 0 : index
    %11 = vector.load %arg6[%c0_5, %c0_6] : memref<128x128xf32, #tpu.memory_space<vmem>>, vector<128x128xf32>
    tpu.vector_store %arg6[%c0_5, %c0_6], %10 {strides = array<i32>} : memref<128x128xf32, #tpu.memory_space<vmem>>, vector<128x128xf32>,
    %c0_i32_7 = arith.constant 0 : i32
    %12 = arith.cmpi eq, %arg1, %c0_i32_7 : i32
    %13 = arith.extui %12 : i1 to i32
    %c0_i32_8 = arith.constant 0 : i32
    %14 = arith.cmpi ne, %13, %c0_i32_8 : i32
    scf.if %14 {
      %c0_9 = arith.constant 0 : index
      %c0_10 = arith.constant 0 : index
      %15 = vector.load %arg6[%c0_9, %c0_10] : memref<128x128xf32, #tpu.memory_space<vmem>>, vector<128x128xf32>
      %cst_11 = arith.constant 0.000000e+00 : f32
      %16 = vector.broadcast %cst_11 : f32 to vector<128x128xf32>
      %17 = arith.maximumf %15, %16 : vector<128x128xf32>
      %c0_12 = arith.constant 0 : index
      %c0_13 = arith.constant 0 : index
      %18 = vector.load %arg4[%c0_12, %c0_13] : memref<128x1xf32, #tpu.memory_space<vmem>>, vector<128x1xf32>
      %19 = vector.broadcast %18 : vector<128x1xf32> to vector<128x128xf32>
      %20 = arith.mulf %17, %19 : vector<128x128xf32>
      %c0_14 = arith.constant 0 : index
      %c0_15 = arith.constant 0 : index
      %21 = vector.load %arg5[%c0_14, %c0_15] : memref<128x128xf32, #tpu.memory_space<vmem>>, vector<128x128xf32>
      tpu.vector_store %arg5[%c0_14, %c0_15], %20 {strides = array<i32>} : memref<128x128xf32, #tpu.memory_space<vmem>>, vector<128x128xf32>,
    } else {
    }
    return
  }
  func.func @transform_0(%arg0: i32, %arg1: i32) -> (i32, i32) {
    %c0_i32 = arith.constant 0 : i32
    return %arg0, %arg1 : i32, i32
  }
  func.func @transform_1(%arg0: i32, %arg1: i32) -> (i32, i32) {
    %c0_i32 = arith.constant 0 : i32
    %c0_i32_0 = arith.constant 0 : i32
    %c0_i32_1 = arith.constant 0 : i32
    return %c0_i32, %c0_i32_0 : i32, i32
  }
  func.func @transform_2(%arg0: i32, %arg1: i32) -> (i32, i32) {
    %c0_i32 = arith.constant 0 : i32
    %c0_i32_0 = arith.constant 0 : i32
    return %arg0, %c0_i32 : i32, i32
  }
  func.func @transform_3(%arg0: i32, %arg1: i32) -> (i32, i32) {
    %c0_i32 = arith.constant 0 : i32
    %c0_i32_0 = arith.constant 0 : i32
    return %arg0, %c0_i32 : i32, i32
  }
}

module attributes {stable_mosaic.version = 11 : i64} {
  func.func @_project_kernel(%arg0: memref<8x32xf32, #tpu.memory_space<vmem>>, %arg1: memref<32x32xf32, #tpu.memory_space<vmem>>, %arg2: memref<1x32xf32, #tpu.memory_space<vmem>>, %arg3: memref<1x32xf32, #tpu.memory_space<vmem>>) attributes {dimension_semantics = [], scalar_prefetch = 0 : i64, scratch_operands = 0 : i64, tpu.core_type = #tpu.core_type<tc>} {
    %c0 = arith.constant 0 : index
    %c0_0 = arith.constant 0 : index
    %0 = vector.load %arg0[%c0, %c0_0] : memref<8x32xf32, #tpu.memory_space<vmem>>, vector<8x32xf32>
    %cst = arith.constant dense<0.000000e+00> : vector<32xf32>
    %1 = vector.multi_reduction <add>, %0, %cst [0] : vector<8x32xf32> to vector<32xf32>
    %2 = vector.shape_cast %1 : vector<32xf32> to vector<1x32xf32>
    %cst_1 = arith.constant 8.000000e+00 : f32
    %3 = vector.broadcast %cst_1 : f32 to vector<1x32xf32>
    %4 = arith.divf %2, %3 : vector<1x32xf32>
    %5 = arith.negf %4 : vector<1x32xf32>
    %6 = math.exp %5 : vector<1x32xf32>
    %cst_2 = arith.constant 1.000000e+00 : f32
    %7 = vector.broadcast %cst_2 : f32 to vector<1x32xf32>
    %8 = arith.addf %7, %6 : vector<1x32xf32>
    %9 = arith.divf %7, %8 : vector<1x32xf32>
    %c0_3 = arith.constant 0 : index
    %c0_4 = arith.constant 0 : index
    %10 = vector.load %arg1[%c0_3, %c0_4] : memref<32x32xf32, #tpu.memory_space<vmem>>, vector<32x32xf32>
    %cst_5 = arith.constant dense<0.000000e+00> : vector<1x32xf32>
    %11 = tpu.matmul %9, %10, %cst_5 {dimension_numbers = #tpu.dot_dimension_numbers<[1], [0], [0], [1], [0, 0, 1, 1], [], []>} : vector<1x32xf32>, vector<32x32xf32>, vector<1x32xf32> -> vector<1x32xf32>
    %c0_6 = arith.constant 0 : index
    %c0_7 = arith.constant 0 : index
    %12 = vector.load %arg2[%c0_6, %c0_7] : memref<1x32xf32, #tpu.memory_space<vmem>>, vector<1x32xf32>
    %13 = arith.addf %11, %12 : vector<1x32xf32>
    %c0_8 = arith.constant 0 : index
    %c0_9 = arith.constant 0 : index
    %14 = vector.load %arg3[%c0_8, %c0_9] : memref<1x32xf32, #tpu.memory_space<vmem>>, vector<1x32xf32>
    tpu.vector_store %arg3[%c0_8, %c0_9], %13 {strides = array<i32>} : memref<1x32xf32, #tpu.memory_space<vmem>>, vector<1x32xf32>,
    return
  }
}

</mosaic_0001>

<bundles_post_ra>
// kernel: encoder_forward.3
= control target key start
LH: loop header
LB: loop body
LE: loop exit
PB: predicated region body
PF: predicated region fallthrough
CT: control target
= control target key end

     0   :  { %vm29_vm0 = vcmask 130048   ;;  %vm223_vm1 = vcmask 261120   ;;  %s459_s1 = inlined_call_operand.vmem [shape: f32[16,32], index: 1, kind: input, shape index: {}]   ;;  %s460_s0 = inlined_call_operand.vmem [shape: f32[128,16], index: 0, kind: input, shape index: {}]   ;;  %s461_s2 = inlined_call_operand.vmem [shape: f32[128,32], index: 2, kind: output, shape index: {}]  }
   0x1   :  { %v28_v0 = vld [vmem:[%s459_s1 + $0x8] sm:$0xff]  ;;  %v27_v1 = vld [vmem:[%s459_s1] sm:$0xff]  ;;  %v13_v6 = vld [vmem:[%s460_s0 + $0x10] sm:$0xff] }
   0x2   :  { %278 = vmatprep.subr.mxu0 %v28_v0  ;;  %306 = vmatprep.subr.mxu1 %v28_v0  ;;  %v11_v2 = vld [vmem:[%s460_s0] sm:$0xff]  ;;  %v12_v4 = vld [vmem:[%s460_s0 + $0x8] sm:$0xff]  ;;  %v21_v7 = vld [vmem:[%s460_s0 + $0x50] sm:$0xff] }
   0x3   :  { %279 = vmatpush3.msra.mxu0 %v28_v0  ;;  %308 = vmatpush3.msra.mxu1 %v28_v0  ;;  %v19_v3 = vld [vmem:[%s460_s0 + $0x40] sm:$0xff]  ;;  %v20_v5 = vld [vmem:[%s460_s0 + $0x48] sm:$0xff]  ;;  %v14_v8 = vld [vmem:[%s460_s0 + $0x18] sm:$0xff] }
   0x4   :  { %280 = vmatprep.subr.mxu0 %v27_v1  ;;  %307 = vmatprep.subr.mxu1 %v27_v1  ;;  %v22_v9 = vld [vmem:[%s460_s0 + $0x58] sm:$0xff]  ;;  %v15_v10 = vld [vmem:[%s460_s0 + $0x20] sm:$0xff]  ;;  %v16_v12 = vld [vmem:[%s460_s0 + $0x28] sm:$0xff] }
   0x5   :  { %281 = vmatpush3.msra.mxu0 %v27_v1  ;;  %309 = vmatpush3.msra.mxu1 %v27_v1  ;;  %v23_v11 = vld [vmem:[%s460_s0 + $0x60] sm:$0xff]  ;;  %v24_v13 = vld [vmem:[%s460_s0 + $0x68] sm:$0xff]  ;;  %v17_v14 = vld [vmem:[%s460_s0 + $0x30] sm:$0xff] }
   0x6   :  { %282 = vmatprep.mubr.msk.f32.mxu0 %vm29_vm0, %v11_v2  ;;  %294 = vmatprep.mubr.msk.f32.mxu1 %vm29_vm0, %v19_v3  ;;  %v25_v15 = vld [vmem:[%s460_s0 + $0x70] sm:$0xff]  ;;  %v18_v16 = vld [vmem:[%s460_s0 + $0x38] sm:$0xff] }
   0x7   :  { %283 = vmatmul.mubr.msk.f32.vlgmr.msra.gmra.mxu0 %vm29_vm0, %v12_v4  ;;  %295 = vmatmul.mubr.msk.f32.vlgmr.msra.gmra.mxu1 %vm29_vm0, %v20_v5  ;;  %v26_v17 = vld [vmem:[%s460_s0 + $0x78] sm:$0xff] }
   0x8   :  { %285 = vmatprep.mubr.msk.f32.mxu0 %vm29_vm0, %v13_v6  ;;  %297 = vmatprep.mubr.msk.f32.mxu1 %vm29_vm0, %v21_v7 }
   0xb   :  { %286 = vmatmul.mubr.msk.f32.gmra.mxu0 %vm29_vm0, %v14_v8  ;;  %298 = vmatmul.mubr.msk.f32.gmra.mxu1 %vm29_vm0, %v22_v9 }
   0xc   :  { %288 = vmatprep.mubr.msk.f32.mxu0 %vm29_vm0, %v15_v10  ;;  %300 = vmatprep.mubr.msk.f32.mxu1 %vm29_vm0, %v23_v11 }
   0xf   :  { %289 = vmatmul.mubr.msk.f32.gmra.mxu0 %vm29_vm0, %v16_v12  ;;  %301 = vmatmul.mubr.msk.f32.gmra.mxu1 %vm29_vm0, %v24_v13 }
  0x10   :  { %291 = vmatprep.mubr.msk.f32.mxu0 %vm29_vm0, %v17_v14  ;;  %303 = vmatprep.mubr.msk.f32.mxu1 %vm29_vm0, %v25_v15 }
  0x13   :  { %292 = vmatmul.mubr.msk.f32.gmra.mxu0 %vm29_vm0, %v18_v16  ;;  %304 = vmatmul.mubr.msk.f32.gmra.mxu1 %vm29_vm0, %v26_v17 }
  0xc7   :  { %v284_v18 = vpop.f32.mrf.mxu0  ;;  %v296_v19 = vpop.f32.mrf.mxu1 }
  0xc8   :  { %225 = vst.msk [vmem:[%s461_s2 + $0x8] sm:$0xff] %vm223_vm1, %v284_v18  ;;  %233 = vst.msk [vmem:[%s461_s2 + $0x48] sm:$0xff] %vm223_vm1, %v296_v19 }
  0xc9   :  { %v144_v20 = vpop.f32.mrf.mxu0  ;;  %v184_v21 = vpop.f32.mrf.mxu1 }
  0xca   :  { %224 = vst.msk [vmem:[%s461_s2] sm:$0xff] %vm223_vm1, %v144_v20  ;;  %232 = vst.msk [vmem:[%s461_s2 + $0x40] sm:$0xff] %vm223_vm1, %v184_v21 }
  0xcb   :  { %v287_v22 = vpop.f32.mrf.mxu0  ;;  %v299_v23 = vpop.f32.mrf.mxu1 }
  0xcc   :  { %227 = vst.msk [vmem:[%s461_s2 + $0x18] sm:$0xff] %vm223_vm1, %v287_v22  ;;  %235 = vst.msk [vmem:[%s461_s2 + $0x58] sm:$0xff] %vm223_vm1, %v299_v23 }
  0xcd   :  { %v154_v24 = vpop.f32.mrf.mxu0  ;;  %v194_v25 = vpop.f32.mrf.mxu1 }
  0xce   :  { %226 = vst.msk [vmem:[%s461_s2 + $0x10] sm:$0xff] %vm223_vm1, %v154_v24  ;;  %234 = vst.msk [vmem:[%s461_s2 + $0x50] sm:$0xff] %vm223_vm1, %v194_v25 }
  0xcf   :  { %v290_v26 = vpop.f32.mrf.mxu0  ;;  %v302_v27 = vpop.f32.mrf.mxu1 }
  0xd0   :  { %229 = vst.msk [vmem:[%s461_s2 + $0x28] sm:$0xff] %vm223_vm1, %v290_v26  ;;  %237 = vst.msk [vmem:[%s461_s2 + $0x68] sm:$0xff] %vm223_vm1, %v302_v27 }
  0xd1   :  { %v164_v28 = vpop.f32.mrf.mxu0  ;;  %v204_v29 = vpop.f32.mrf.mxu1 }
  0xd2   :  { %228 = vst.msk [vmem:[%s461_s2 + $0x20] sm:$0xff] %vm223_vm1, %v164_v28  ;;  %236 = vst.msk [vmem:[%s461_s2 + $0x60] sm:$0xff] %vm223_vm1, %v204_v29 }
  0xd3   :  { %v293_v30 = vpop.f32.mrf.mxu0  ;;  %v305_v31 = vpop.f32.mrf.mxu1 }
  0xd4   :  { %231 = vst.msk [vmem:[%s461_s2 + $0x38] sm:$0xff] %vm223_vm1, %v293_v30  ;;  %239 = vst.msk [vmem:[%s461_s2 + $0x78] sm:$0xff] %vm223_vm1, %v305_v31 }
  0xd5   :  { %v174_v32 = vpop.f32.mrf.mxu0  ;;  %v214_v33 = vpop.f32.mrf.mxu1 }
  0xd6   :  { %230 = vst.msk [vmem:[%s461_s2 + $0x30] sm:$0xff] %vm223_vm1, %v174_v32  ;;  %238 = vst.msk [vmem:[%s461_s2 + $0x70] sm:$0xff] %vm223_vm1, %v214_v33 }

// kernel: encoder_forward.4
= control target key start
LH: loop header
LB: loop body
LE: loop exit
PB: predicated region body
PF: predicated region fallthrough
CT: control target
= control target key end

     0   :  { %v581_v1 = vmov 0   ;;  %s752_s1 = inlined_call_operand.vmem [shape: bf16[128,128], index: 1, kind: input, shape index: {}]   ;;  %s753_s0 = inlined_call_operand.vmem [shape: bf16[128,128], index: 0, kind: input, shape index: {}]   ;;  %s754_s2 = inlined_call_operand.vmem [shape: f32[128,1], index: 2, kind: input, shape index: {}]   ;;  %s755_s3 = inlined_call_operand.vmem [shape: f32[128,128], index: 3, kind: output, shape index: {}]  }
   0x1   :  { %v565_v0 = vld [vmem:[%s752_s1 + $0x38] sm:$0xff]   ;;  %564 = vset.pattern.permute.xlu1 %v581_v1  ;;  %563 = vset.pattern.permute.xlu0 %v581_v1  ;;  %v566_v2 = vld [vmem:[%s752_s1 + $0x30] sm:$0xff]   ;;  %v567_v3 = vld [vmem:[%s752_s1 + $0x28] sm:$0xff]  }
   0x2   :  { %514 = vmatprep.subr.bf16.mxu0 %v565_v0  ;;  %546 = vmatprep.subr.bf16.mxu1 %v565_v0  ;;  %v568_v4 = vld [vmem:[%s752_s1 + $0x20] sm:$0xff]   ;;  %v569_v7 = vld [vmem:[%s752_s1 + $0x18] sm:$0xff]   ;;  %v570_v8 = vld [vmem:[%s752_s1 + $0x10] sm:$0xff]  }
   0x3   :  { %515 = vmatpush3.bf16.msra.mxu0 %v565_v0  ;;  %554 = vmatpush3.bf16.msra.mxu1 %v565_v0  ;;  %v573_v5 = vld [vmem:[%s753_s0] sm:$0xff]   ;;  %v350_v9 = vld [vmem:[%s754_s2 + $0x10] sm:$0xff]  ;;  %v351_v11 = vld [vmem:[%s754_s2 + $0x18] sm:$0xff] }
   0x4   :  { %516 = vmatprep.subr.bf16.mxu0 %v566_v2  ;;  %547 = vmatprep.subr.bf16.mxu1 %v566_v2  ;;  %v574_v6 = vld [vmem:[%s753_s0 + $0x20] sm:$0xff]   ;;  %v349_v12 = vld [vmem:[%s754_s2 + $0x8] sm:$0xff]  ;;  %v355_v17 = vld [vmem:[%s754_s2 + $0x38] sm:$0xff] }
   0x5   :  { %530 = vmatprep.mubr.bf16.mxu0 %v573_v5  ;;  %538 = vmatprep.mubr.bf16.mxu1 %v574_v6  ;;  %v348_v10 = vld [vmem:[%s754_s2] sm:$0xff]  ;;  %v571_v13 = vld [vmem:[%s752_s1 + $0x8] sm:$0xff]   ;;  %v354_v18 = vld [vmem:[%s754_s2 + $0x30] sm:$0xff] }
   0x6   :  { %376 = vperm.xlu1 %564, %v350_v9   ;;  %366 = vperm.xlu0 %563, %v348_v10   ;;  %v353_v14 = vld [vmem:[%s754_s2 + $0x28] sm:$0xff]  ;;  %v352_v15 = vld [vmem:[%s754_s2 + $0x20] sm:$0xff]  ;;  %v577_v23 = vld [vmem:[%s753_s0 + $0x10] sm:$0xff]  }
   0x7   :  { %517 = vmatpush3.bf16.msra.mxu0 %v566_v2  ;;  %555 = vmatpush3.bf16.msra.mxu1 %v566_v2  ;;  %v572_v16 = vld [vmem:[%s752_s1] sm:$0xff]   ;;  %v575_v19 = vld [vmem:[%s753_s0 + $0x8] sm:$0xff]   ;;  %v578_v24 = vld [vmem:[%s753_s0 + $0x30] sm:$0xff]  }
   0x8   :  { %518 = vmatprep.subr.bf16.mxu0 %v567_v3  ;;  %548 = vmatprep.subr.bf16.mxu1 %v567_v3  ;;  %v576_v20 = vld [vmem:[%s753_s0 + $0x28] sm:$0xff]   ;;  %v356_v22 = vld [vmem:[%s754_s2 + $0x40] sm:$0xff]  ;;  %v359_v25 = vld [vmem:[%s754_s2 + $0x58] sm:$0xff] }
   0x9   :  { %v357_v21 = vld [vmem:[%s754_s2 + $0x48] sm:$0xff]  ;;  %v358_v26 = vld [vmem:[%s754_s2 + $0x50] sm:$0xff]  ;;  %v579_v27 = vld [vmem:[%s753_s0 + $0x18] sm:$0xff]  }
   0xa   :  { %381 = vperm.xlu1 %564, %v351_v11   ;;  %371 = vperm.xlu0 %563, %v349_v12   ;;  %v580_v28 = vld [vmem:[%s753_s0 + $0x38] sm:$0xff]   ;;  %v361_v29 = vld [vmem:[%s754_s2 + $0x68] sm:$0xff]  ;;  %v360_v30 = vld [vmem:[%s754_s2 + $0x60] sm:$0xff] }
   0xb   :  { %519 = vmatpush3.bf16.msra.mxu0 %v567_v3  ;;  %556 = vmatpush3.bf16.msra.mxu1 %v567_v3  ;;  %v363_v31 = vld [vmem:[%s754_s2 + $0x78] sm:$0xff]  ;;  %v362_v32 = vld [vmem:[%s754_s2 + $0x70] sm:$0xff] }
   0xc   :  { %520 = vmatprep.subr.bf16.mxu0 %v568_v4  ;;  %549 = vmatprep.subr.bf16.mxu1 %v568_v4 }
   0xe   :  { %391 = vperm.xlu1 %564, %v353_v14   ;;  %386 = vperm.xlu0 %563, %v352_v15  }
   0xf   :  { %521 = vmatpush3.bf16.msra.mxu0 %v568_v4  ;;  %557 = vmatpush3.bf16.msra.mxu1 %v568_v4 }
  0x10   :  { %522 = vmatprep.subr.bf16.mxu0 %v569_v7  ;;  %550 = vmatprep.subr.bf16.mxu1 %v569_v7 }
  0x12   :  { %401 = vperm.xlu1 %564, %v355_v17   ;;  %396 = vperm.xlu0 %563, %v354_v18  }
  0x13   :  { %523 = vmatpush3.bf16.msra.mxu0 %v569_v7  ;;  %558 = vmatpush3.bf16.msra.mxu1 %v569_v7 }
  0x14   :  { %524 = vmatprep.subr.bf16.mxu0 %v570_v8  ;;  %551 = vmatprep.subr.bf16.mxu1 %v570_v8 }
  0x16   :  { %411 = vperm.xlu1 %564, %v357_v21   ;;  %406 = vperm.xlu0 %563, %v356_v22  }
  0x17   :  { %525 = vmatpush3.bf16.msra.mxu0 %v570_v8  ;;  %559 = vmatpush3.bf16.msra.mxu1 %v570_v8 }
  0x18   :  { %526 = vmatprep.subr.bf16.mxu0 %v571_v13  ;;  %552 = vmatprep.subr.bf16.mxu1 %v571_v13 }
  0x1a   :  { %421 = vperm.xlu1 %564, %v359_v25   ;;  %416 = vperm.xlu0 %563, %v358_v26  }
  0x1b   :  { %527 = vmatpush3.bf16.msra.mxu0 %v571_v13  ;;  %560 = vmatpush3.bf16.msra.mxu1 %v571_v13 }
  0x1c   :  { %528 = vmatprep.subr.bf16.mxu0 %v572_v16  ;;  %553 = vmatprep.subr.bf16.mxu1 %v572_v16 }
  0x1e   :  { %431 = vperm.xlu1 %564, %v361_v29   ;;  %426 = vperm.xlu0 %563, %v360_v30  }
  0x1f   :  { %529 = vmatpush3.bf16.msra.mxu0 %v572_v16  ;;  %561 = vmatpush3.bf16.msra.mxu1 %v572_v16 }
  0x22   :  { %531 = vmatmul.mubr.bf16.vlgmr.msra.gmra.mxu0 %v575_v19  ;;  %539 = vmatmul.mubr.bf16.vlgmr.msra.gmra.mxu1 %v576_v20 }
  0x23   :  { %534 = vmatprep.mubr.bf16.mxu0 %v577_v23  ;;  %542 = vmatprep.mubr.bf16.mxu1 %v578_v24 }
  0x24   :  { %441 = vperm.xlu1 %564, %v363_v31   ;;  %436 = vperm.xlu0 %563, %v362_v32  }
  0x2a   :  { %535 = vmatmul.mubr.bf16.gmra.mxu0 %v579_v27  ;;  %543 = vmatmul.mubr.bf16.gmra.mxu1 %v580_v28 }
  0x81   :  { %v367_v33 = vpop.permute.xlu0 %366  ;;  %v377_v34 = vpop.permute.xlu1 %376 }
  0x85   :  { %v372_v35 = vpop.permute.xlu0 %371  ;;  %v382_v36 = vpop.permute.xlu1 %381 }
  0x89   :  { %v387_v37 = vpop.permute.xlu0 %386  ;;  %v698_v38 = vpop.permute.xlu1 %391 }
  0x8d   :  { %v397_v39 = vpop.permute.xlu0 %396  ;;  %v700_v40 = vpop.permute.xlu1 %401 }
  0x91   :  { %v407_v41 = vpop.permute.xlu0 %406  ;;  %v412_v42 = vpop.permute.xlu1 %411 }
  0x95   :  { %v417_v43 = vpop.permute.xlu0 %416  ;;  %v422_v46 = vpop.permute.xlu1 %421 }
  0x99   :  { %v427_v51 = vpop.permute.xlu0 %426  ;;  %v432_v0 = vpop.permute.xlu1 %431 }
  0x9f   :  { %v437_v7 = vpop.permute.xlu0 %436  ;;  %v442_v20 = vpop.permute.xlu1 %441 }
  0xe2   :  { %v532_v44 = vpop.f32.mrf.mxu0  ;;  %v540_v45 = vpop.f32.mrf.mxu1 }
  0xe3   :  { %v334_v47 = vmax.f32 %v532_v44, 0.0  ;;  %v342_v48 = vmax.f32 %v540_v45, 0.0 }
  0xe4   :  { %v218_v49 = vpop.f32.mrf.mxu0  ;;  %v250_v50 = vpop.f32.mrf.mxu1 }
  0xe5   :  { %v446_v52 = vmul.f32 %v377_v34, %v334_v47  ;;  %v454_v53 = vmul.f32 %v417_v43, %v342_v48  ;;  %v332_v54 = vmax.f32 %v218_v49, 0.0  ;;  %v340_v55 = vmax.f32 %v250_v50, 0.0 }
  0xe6   :  { %v533_v56 = vpop.f32.mrf.mxu0  ;;  %v541_v57 = vpop.f32.mrf.mxu1 }
  0xe7   :  { %462 = vst [vmem:[%s755_s3 + $0x10] sm:$0xff] %v446_v52  ;;  %470 = vst [vmem:[%s755_s3 + $0x50] sm:$0xff] %v454_v53  ;;  %v444_v58 = vmul.f32 %v367_v33, %v332_v54  ;;  %v452_v59 = vmul.f32 %v407_v41, %v340_v55  ;;  %v335_v60 = vmax.f32 %v533_v56, 0.0  ;;  %v343_v61 = vmax.f32 %v541_v57, 0.0 }
  0xe8   :  { %v221_v62 = vpop.f32.mrf.mxu0  ;;  %v253_v63 = vpop.f32.mrf.mxu1 }
  0xe9   :  { %460 = vst [vmem:[%s755_s3] sm:$0xff] %v444_v58  ;;  %468 = vst [vmem:[%s755_s3 + $0x40] sm:$0xff] %v452_v59  ;;  %v447_v1 = vmul.f32 %v382_v36, %v335_v60  ;;  %v455_v2 = vmul.f32 %v422_v46, %v343_v61  ;;  %v333_v3 = vmax.f32 %v221_v62, 0.0  ;;  %v341_v4 = vmax.f32 %v253_v63, 0.0 }
  0xea   :  { %v536_v5 = vpop.f32.mrf.mxu0  ;;  %v544_v6 = vpop.f32.mrf.mxu1 }
  0xeb   :  { %463 = vst [vmem:[%s755_s3 + $0x18] sm:$0xff] %v447_v1  ;;  %471 = vst [vmem:[%s755_s3 + $0x58] sm:$0xff] %v455_v2  ;;  %v445_v8 = vmul.f32 %v372_v35, %v333_v3  ;;  %v453_v9 = vmul.f32 %v412_v42, %v341_v4  ;;  %v338_v10 = vmax.f32 %v536_v5, 0.0  ;;  %v346_v11 = vmax.f32 %v544_v6, 0.0 }
  0xec   :  { %v234_v12 = vpop.f32.mrf.mxu0  ;;  %v266_v13 = vpop.f32.mrf.mxu1 }
  0xed   :  { %461 = vst [vmem:[%s755_s3 + $0x8] sm:$0xff] %v445_v8  ;;  %469 = vst [vmem:[%s755_s3 + $0x48] sm:$0xff] %v453_v9  ;;  %v450_v14 = vmul.f32 %v397_v39, %v338_v10  ;;  %v458_v15 = vmul.f32 %v437_v7, %v346_v11  ;;  %v336_v16 = vmax.f32 %v234_v12, 0.0  ;;  %v344_v17 = vmax.f32 %v266_v13, 0.0 }
  0xee   :  { %v537_v18 = vpop.f32.mrf.mxu0  ;;  %v545_v19 = vpop.f32.mrf.mxu1 }
  0xef   :  { %466 = vst [vmem:[%s755_s3 + $0x30] sm:$0xff] %v450_v14  ;;  %474 = vst [vmem:[%s755_s3 + $0x70] sm:$0xff] %v458_v15  ;;  %v448_v21 = vmul.f32 %v387_v37, %v336_v16  ;;  %v456_v22 = vmul.f32 %v427_v51, %v344_v17  ;;  %v339_v23 = vmax.f32 %v537_v18, 0.0  ;;  %v347_v24 = vmax.f32 %v545_v19, 0.0 }
  0xf0   :  { %v237_v25 = vpop.f32.mrf.mxu0  ;;  %v269_v26 = vpop.f32.mrf.mxu1 }
  0xf1   :  { %464 = vst [vmem:[%s755_s3 + $0x20] sm:$0xff] %v448_v21  ;;  %472 = vst [vmem:[%s755_s3 + $0x60] sm:$0xff] %v456_v22  ;;  %v451_v27 = vmul.f32 %v700_v40, %v339_v23  ;;  %v459_v28 = vmul.f32 %v442_v20, %v347_v24  ;;  %v337_v29 = vmax.f32 %v237_v25, 0.0  ;;  %v345_v30 = vmax.f32 %v269_v26, 0.0 }
  0xf3   :  { %467 = vst [vmem:[%s755_s3 + $0x38] sm:$0xff] %v451_v27  ;;  %475 = vst [vmem:[%s755_s3 + $0x78] sm:$0xff] %v459_v28  ;;  %v449_v31 = vmul.f32 %v698_v38, %v337_v29  ;;  %v457_v32 = vmul.f32 %v432_v0, %v345_v30 }
  0xf5   :  { %465 = vst [vmem:[%s755_s3 + $0x28] sm:$0xff] %v449_v31  ;;  %473 = vst [vmem:[%s755_s3 + $0x68] sm:$0xff] %v457_v32 }

// kernel: encoder_forward.5
= control target key start
LH: loop header
LB: loop body
LE: loop exit
PB: predicated region body
PF: predicated region fallthrough
CT: control target
= control target key end

     0   :  { %vm16_vm0 = vcmask 261120   ;;  %v173_v1 = vmov 0.0   ;;  %vm174_vm1 = vmmov 0   ;;  %s219_s0 = inlined_call_operand.vmem [shape: f32[8,32], index: 0, kind: input, shape index: {}]   ;;  %s220_s1 = inlined_call_operand.vmem [shape: f32[32,32], index: 1, kind: input, shape index: {}]   ;;  %s221_s2 = inlined_call_operand.vmem [shape: f32[1,32], index: 2, kind: input, shape index: {}]   ;;  %s222_s3 = inlined_call_operand.hbm [shape: f32[1,32], index: 3, kind: output, shape index: {}]  }
   0x1   :  { %v35_v0 = vld [vmem:[%s220_s1 + $0x18] sm:$0xff]  ;;  %133 = vmatprep.subr.mxu0 %v173_v1  ;;  %v34_v2 = vld [vmem:[%s220_s1 + $0x10] sm:$0xff]  ;;  %141 = vmatprep.mubr.msk.f32.mxu0 %vm174_vm1, %v173_v1  ;;  %v15_v3 = vld [vmem:[%s219_s0] sm:$0xff] }
   0x2   :  { %134 = vmatpush3.msra.mxu0 %v35_v0  ;;  %v17_v4 = vsel %vm16_vm0, %v15_v3, 0.0 }
   0x3   :  { %8 = vsyncpa [#allocation3], 0  ;;  %135 = vmatprep.subr.mxu0 %v173_v1  ;;  %v33_v5 = vld [vmem:[%s220_s1 + $0x8] sm:$0xff]  ;;  %v18_v6 = vrot.slane %v17_v4, 4  ;;  %v32_v7 = vld [vmem:[%s220_s1] sm:$0xff]  ;;  %s175_s1 = smov [#allocation2]  }
   0x4   :  { %136 = vmatpush3.msra.mxu0 %v34_v2  ;;  %v36_v18 = vld [vmem:[%s221_s2] sm:$0x1]  ;;  %s118_s23 = sshll.u32 %s175_s1, 4  ;;  %vm110_vm2 = vcmask 253952   ;;  %s119_s23 = int_to_ptr.vmem [resolvable:$true] %s118_s23 }
   0x5   :  { %137 = vmatprep.subr.mxu0 %v173_v1  ;;  %v19_v8 = vadd.f32 %v18_v6, %v17_v4  ;;  %s151_s24 = scalar_lea.vmem %s119_s23, 16  ;;  %s155_s25 = scalar_lea.vmem %s119_s23, 32 }
   0x6   :  { %138 = vmatpush3.msra.mxu0 %v33_v5  ;;  %p152_p0 = scmp.ne.s32.totalorder %s119_s23, %s151_s24  ;;  %p156_p1 = scmp.lt.s32.totalorder %s119_s23, %s119_s23 }
   0x7   :  { %139 = vmatprep.subr.mxu0 %v173_v1  ;;  %v20_v9 = vrot.slane %v19_v8, 2  ;;  %p157_p2 = scmp.lt.s32.totalorder %s155_s25, %s151_s24 }
   0x8   :  { %140 = vmatpush3.msra.mxu0 %v32_v7 }
   0x9   :  { %v21_v10 = vadd.f32 %v20_v9, %v19_v8  ;;  %p158_p3 = por %p157_p2, %p156_p1 }
   0xb   :  { %v22_v11 = vrot.slane %v21_v10, 1  ;;  %p159_p4 = pnand %p158_p3, %p152_p0 }
   0xd   :  { %v23_v12 = vadd.f32 %v22_v11, %v21_v10 }
   0xf   :  { %v126_v13 = vmul.f32 -0.125, %v23_v12 }
  0x11   :  { %v27_v14 = vmul.f32 1.442695, %v126_v13 }
  0x13   :  { %147 = vpow2.f32 %v27_v14 }
  0x20   :  { %v148_v15 = vpop.eup %147 }
  0x21   :  { %v29_v16 = vadd.f32 1.0, %v148_v15 }
  0x23   :  { %149 = vrcp.f32 %v29_v16 }
  0x30   :  { %v150_v17 = vpop.eup %149 }
  0x31   :  { %142 = vmatmul.mubr.msk.f32.vlgmr.msra.gmra.mxu0 %vm16_vm0, %v150_v17 }
  0xf1   :  { %v106_v19 = vpop.f32.mrf.mxu0 }
  0xf2   :  { %v107_v20 = vadd.f32 %v106_v19, %v36_v18 }
  0xf3   :  { %v143_v21 = vpop.f32.mrf.mxu0 }
  0xf4   :  { %111 = vst.msk [vmem:[#allocation2] sm:$0x1] %vm110_vm2, %v107_v20 }
  0xf5   :  { %162 = shalt.err (!%p159_p4)
}
  0xf6   :  { %121 = dma.vmem_to_hbm [thread:$0]  %s119_s23, 16, %s222_s3, [#allocation3]  }
  0xf7   :  { %171 = dma.done.wait [#allocation3], 16  }
  0xf8   :  { %172 = vsyncadd [#allocation3], 4294967280 }
  0xf9   :  { %125 = vsyncpa [#allocation3], 1 }

</bundles_post_ra>
